<compile_context>
chip_gen: v6e
topology: v6e:2x2x1
jax: 0.10.0
libtpu: 0.0.40
codegen_flags: <defaults>
</compile_context>

<pallas_src>
import functools

import jax
import jax.numpy as jnp
from jax.experimental import pallas as pl
from jax.experimental.pallas import tpu as pltpu


def _round_up(x, m):
    return ((x + m - 1) // m) * m


def _choose_out_tiling(d_in, target=512):
    """Padded feature size Dp and output column tile TN (multiples of 128)."""
    dp = _round_up(d_in, 128)
    if dp < target:
        tn = 128                      # small model: lane-dense 128-wide tiles
    else:
        dp = _round_up(dp, target)    # pad so TN never degrades below target
        tn = target
        if dp == target:              # guarantee >=2 column tiles (v7x megacore)
            tn = target // 2
    return dp, tn


def _pick_k_tile(dp, max_tile=2048):
    """Largest multiple of 128 that divides dp and is <= max_tile."""
    tk = max(128, min(dp, max_tile))
    tk = (tk // 128) * 128
    while dp % tk != 0:
        tk -= 128
    return tk


def _linear1_kernel(x_ref, w1t_ref, b1_ref, h_ref, acc_ref):
    # x tile: (Bp, TK) bf16   w1.T tile: (TK, Vp) bf16   b1: (1, Vp) f32
    # h out : (Bp, Vp) f32    acc scratch: (Bp, Vp) f32
    k = pl.program_id(0)

    @pl.when(k == 0)
    def _():
        acc_ref[...] = jnp.zeros_like(acc_ref)

    acc_ref[...] += jnp.dot(x_ref[...], w1t_ref[...],
                            preferred_element_type=jnp.float32)

    @pl.when(k == pl.num_programs(0) - 1)
    def _():
        h_ref[...] = acc_ref[...] + b1_ref[...]


def _linear2_softmax_kernel(h_ref, w2t_ref, b2_ref, o_ref, *, n_valid_rows):
    # h: (Bp, Vp) f32 (resident)  w2.T tile: (Vp, TN) bf16  b2 tile: (1, TN) f32
    h = h_ref[...].astype(jnp.bfloat16)
    y = jnp.dot(h, w2t_ref[...],
                preferred_element_type=jnp.float32) + b2_ref[...]

    if n_valid_rows is not None:
        # Padded batch rows must not take part in the dim=0 softmax: add a
        # (Bp, 1) 0/-inf column vector (broadcast over lanes).
        row = jax.lax.broadcasted_iota(jnp.int32, (y.shape[0], 1), 0)
        y = y + jnp.where(row < n_valid_rows, 0.0, -jnp.inf).astype(y.dtype)

    # softmax over dim=0 (across rows), numerically stabilized, f32 throughout.
    m = jnp.max(y, axis=0, keepdims=True)
    e = jnp.exp(y - m)
    s = jnp.sum(e, axis=0, keepdims=True)
    o_ref[...] = e * pl.reciprocal(s, approx=True)


@functools.partial(jax.jit, static_argnames=("out_tile", "k_tile"))
def word2vec_forward(x, w1, b1, w2, b2, *, out_tile=512, k_tile=2048):
    """x: (B, D_in). Torch nn.Linear layout: w1 (V, D_in), b1 (V,),
    w2 (D_in, V), b2 (D_in,). Returns softmax(dim=0)(linear2(linear1(x)))."""
    B, D_in = x.shape
    V = w1.shape[0]

    Bp = _round_up(B, 8)
    Vp = _round_up(V, 128)
    Dp, TN = _choose_out_tiling(D_in, out_tile)
    TK = _pick_k_tile(Dp, k_tile)

    f32, bf16 = jnp.float32, jnp.bfloat16

    # Sublane/lane-dense zero padding (exact for the math; padded output
    # columns are sliced off, padded rows are masked out of the softmax).
    # All of this fuses under the enclosing jit.
    x_p = jnp.zeros((Bp, Dp), bf16).at[:B, :D_in].set(x.astype(bf16))
    w1t_p = jnp.zeros((Dp, Vp), bf16).at[:D_in, :V].set(w1.T.astype(bf16))
    w2t_p = jnp.zeros((Vp, Dp), bf16).at[:V, :D_in].set(w2.T.astype(bf16))
    b1_p = jnp.zeros((1, Vp), f32).at[0, :V].set(b1.astype(f32))
    b2_p = jnp.zeros((1, Dp), f32).at[0, :D_in].set(b2.astype(f32))

    # ---- kernel A: h = x @ w1.T + b1, K-tiled over D_in -------------------
    h = pl.pallas_call(
        _linear1_kernel,
        out_shape=jax.ShapeDtypeStruct((Bp, Vp), f32),
        grid=(Dp // TK,),
        in_specs=[
            pl.BlockSpec((Bp, TK), lambda k: (0, k)),   # x K-tile
            pl.BlockSpec((TK, Vp), lambda k: (k, 0)),   # w1.T K-tile
            pl.BlockSpec((1, Vp), lambda k: (0, 0)),    # b1 (fetched once)
        ],
        out_specs=pl.BlockSpec((Bp, Vp), lambda k: (0, 0)),
        scratch_shapes=[pltpu.VMEM((Bp, Vp), jnp.float32)],
        compiler_params=pltpu.CompilerParams(
            dimension_semantics=("arbitrary",)),        # reduction axis
    )(x_p, w1t_p, b1_p)

    # ---- kernel B: softmax_dim0(h @ w2.T + b2), column-parallel -----------
    kernel_b = functools.partial(
        _linear2_softmax_kernel, n_valid_rows=None if B == Bp else B)

    out = pl.pallas_call(
        kernel_b,
        out_shape=jax.ShapeDtypeStruct((Bp, Dp), f32),
        grid=(Dp // TN,),
        in_specs=[
            pl.BlockSpec((Bp, Vp), lambda j: (0, 0)),   # h: whole batch, resident
            pl.BlockSpec((Vp, TN), lambda j: (0, j)),   # w2.T column tile
            pl.BlockSpec((1, TN), lambda j: (0, j)),    # b2 column tile
        ],
        out_specs=pl.BlockSpec((Bp, TN), lambda j: (0, j)),
        compiler_params=pltpu.CompilerParams(
            # Column tiles are independent (softmax is per-column) -> shard
            # across TensorCores. The batch axis (softmax group) is never tiled.
            dimension_semantics=("parallel",)),
    )(h, w2t_p, b2_p)

    return out[:B, :D_in]


def _reference(x, w1, b1, w2, b2):
    hi = jax.lax.Precision.HIGHEST
    h = jnp.dot(x, w1.T, precision=hi) + b1
    y = jnp.dot(h, w2.T, precision=hi) + b2
    y = y - jnp.max(y, axis=0, keepdims=True)
    e = jnp.exp(y)
    return e / jnp.sum(e, axis=0, keepdims=True)


if __name__ == "__main__":
    # Small shapes consistent with the module: input_shape (vocab) = 32,
    # vector_size (embedding dim) = 16, batch = 8.
    B, D_in, V = 8, 32, 16

    key = jax.random.PRNGKey(0)
    kx, k1, k2, k3, k4 = jax.random.split(key, 5)

    # Deterministic init mimicking nn.Linear's U(-1/sqrt(fan_in), 1/sqrt(fan_in)).
    bound1 = 1.0 / jnp.sqrt(D_in)
    bound2 = 1.0 / jnp.sqrt(V)
    w1 = jax.random.uniform(k1, (V, D_in), jnp.float32, -bound1, bound1)  # linear1.weight
    b1 = jax.random.uniform(k2, (V,), jnp.float32, -bound1, bound1)       # linear1.bias
    w2 = jax.random.uniform(k3, (D_in, V), jnp.float32, -bound2, bound2)  # linear2.weight
    b2 = jax.random.uniform(k4, (D_in,), jnp.float32, -bound2, bound2)    # linear2.bias

    x = jax.random.normal(kx, (B, D_in), jnp.float32)

    out = word2vec_forward(x, w1, b1, w2, b2)
    out = jax.block_until_ready(out)

    ref = _reference(x, w1, b1, w2, b2)
    assert out.shape == (B, D_in)
    # bf16 weights/activations (f32 accumulate) + approx reciprocal: loosened
    # tolerance vs the fp32 reference.
    assert jnp.allclose(out, ref, atol=3e-2, rtol=3e-2), "mismatch vs JAX reference"

    print("KERNEL_OK")
</pallas_src>

<mosaic_0001>
module attributes {stable_mosaic.version = 11 : i64} {
  func.func @_linear1_kernel(%arg0: i32, %arg1: memref<8x128xbf16, #tpu.memory_space<vmem>>, %arg2: memref<128x128xbf16, #tpu.memory_space<vmem>>, %arg3: memref<1x128xf32, #tpu.memory_space<vmem>>, %arg4: memref<8x128xf32, #tpu.memory_space<vmem>>, %arg5: memref<8x128xf32, #tpu.memory_space<vmem>>) attributes {dimension_semantics = [#tpu.dimension_semantics<arbitrary>], iteration_bounds = array<i64: 1>, scalar_prefetch = 0 : i64, scratch_operands = 1 : i64, tpu.core_type = #tpu.core_type<tc>, window_params = [{transform_indices = @transform_0, window_bounds = array<i64: 8, 128>}, {transform_indices = @transform_1, window_bounds = array<i64: 128, 128>}, {pipeline_mode = #tpu.pipeline_mode<synchronous>, transform_indices = @transform_2, window_bounds = array<i64: 1, 128>}, {pipeline_mode = #tpu.pipeline_mode<synchronous>, transform_indices = @transform_3, window_bounds = array<i64: 8, 128>}]} {
    %c0_i32 = arith.constant 0 : i32
    %0 = arith.cmpi eq, %arg0, %c0_i32 : i32
    %1 = arith.extui %0 : i1 to i32
    %c0_i32_0 = arith.constant 0 : i32
    %2 = arith.cmpi ne, %1, %c0_i32_0 : i32
    scf.if %2 {
      %cst_10 = arith.constant 0.000000e+00 : f32
      %12 = vector.broadcast %cst_10 : f32 to vector<8x128xf32>
      %c0_11 = arith.constant 0 : index
      %c0_12 = arith.constant 0 : index
      %13 = vector.load %arg5[%c0_11, %c0_12] : memref<8x128xf32, #tpu.memory_space<vmem>>, vector<8x128xf32>
      tpu.vector_store %arg5[%c0_11, %c0_12], %12 {strides = array<i32>} : memref<8x128xf32, #tpu.memory_space<vmem>>, vector<8x128xf32>,
    } else {
    }
    %c0 = arith.constant 0 : index
    %c0_1 = arith.constant 0 : index
    %3 = vector.load %arg5[%c0, %c0_1] : memref<8x128xf32, #tpu.memory_space<vmem>>, vector<8x128xf32>
    %c0_2 = arith.constant 0 : index
    %c0_3 = arith.constant 0 : index
    %4 = vector.load %arg1[%c0_2, %c0_3] : memref<8x128xbf16, #tpu.memory_space<vmem>>, vector<8x128xbf16>
    %c0_4 = arith.constant 0 : index
    %c0_5 = arith.constant 0 : index
    %5 = vector.load %arg2[%c0_4, %c0_5] : memref<128x128xbf16, #tpu.memory_space<vmem>>, vector<128x128xbf16>
    %cst = arith.constant dense<0.000000e+00> : vector<8x128xf32>
    %6 = tpu.matmul %4, %5, %cst {dimension_numbers = #tpu.dot_dimension_numbers<[1], [0], [0], [1], [0, 0, 1, 1], [], []>} : vector<8x128xbf16>, vector<128x128xbf16>, vector<8x128xf32> -> vector<8x128xf32>
    %7 = arith.addf %3, %6 : vector<8x128xf32>
    %c0_6 = arith.constant 0 : index
    %c0_7 = arith.constant 0 : index
    %8 = vector.load %arg5[%c0_6, %c0_7] : memref<8x128xf32, #tpu.memory_space<vmem>>, vector<8x128xf32>
    tpu.vector_store %arg5[%c0_6, %c0_7], %7 {strides = array<i32>} : memref<8x128xf32, #tpu.memory_space<vmem>>, vector<8x128xf32>,
    %c0_i32_8 = arith.constant 0 : i32
    %9 = arith.cmpi eq, %arg0, %c0_i32_8 : i32
    %10 = arith.extui %9 : i1 to i32
    %c0_i32_9 = arith.constant 0 : i32
    %11 = arith.cmpi ne, %10, %c0_i32_9 : i32
    scf.if %11 {
      %c0_10 = arith.constant 0 : index
      %c0_11 = arith.constant 0 : index
      %12 = vector.load %arg5[%c0_10, %c0_11] : memref<8x128xf32, #tpu.memory_space<vmem>>, vector<8x128xf32>
      %c0_12 = arith.constant 0 : index
      %c0_13 = arith.constant 0 : index
      %13 = vector.load %arg3[%c0_12, %c0_13] : memref<1x128xf32, #tpu.memory_space<vmem>>, vector<1x128xf32>
      %14 = vector.broadcast %13 : vector<1x128xf32> to vector<8x128xf32>
      %15 = arith.addf %12, %14 : vector<8x128xf32>
      %c0_14 = arith.constant 0 : index
      %c0_15 = arith.constant 0 : index
      %16 = vector.load %arg4[%c0_14, %c0_15] : memref<8x128xf32, #tpu.memory_space<vmem>>, vector<8x128xf32>
      tpu.vector_store %arg4[%c0_14, %c0_15], %15 {strides = array<i32>} : memref<8x128xf32, #tpu.memory_space<vmem>>, vector<8x128xf32>,
    } else {
    }
    return
  }
  func.func @transform_0(%arg0: i32) -> (i32, i32) {
    %c0_i32 = arith.constant 0 : i32
    %c0_i32_0 = arith.constant 0 : i32
    return %c0_i32, %arg0 : i32, i32
  }
  func.func @transform_1(%arg0: i32) -> (i32, i32) {
    %c0_i32 = arith.constant 0 : i32
    %c0_i32_0 = arith.constant 0 : i32
    return %arg0, %c0_i32 : i32, i32
  }
  func.func @transform_2(%arg0: i32) -> (i32, i32) {
    %c0_i32 = arith.constant 0 : i32
    %c0_i32_0 = arith.constant 0 : i32
    %c0_i32_1 = arith.constant 0 : i32
    return %c0_i32, %c0_i32_0 : i32, i32
  }
  func.func @transform_3(%arg0: i32) -> (i32, i32) {
    %c0_i32 = arith.constant 0 : i32
    %c0_i32_0 = arith.constant 0 : i32
    %c0_i32_1 = arith.constant 0 : i32
    return %c0_i32, %c0_i32_0 : i32, i32
  }
}

module attributes {stable_mosaic.version = 11 : i64} {
  func.func @_linear2_softmax_kernel(%arg0: i32, %arg1: memref<8x128xf32, #tpu.memory_space<vmem>>, %arg2: memref<128x128xbf16, #tpu.memory_space<vmem>>, %arg3: memref<1x128xf32, #tpu.memory_space<vmem>>, %arg4: memref<8x128xf32, #tpu.memory_space<vmem>>) attributes {dimension_semantics = [#tpu.dimension_semantics<parallel>], iteration_bounds = array<i64: 1>, scalar_prefetch = 0 : i64, scratch_operands = 0 : i64, tpu.core_type = #tpu.core_type<tc>, window_params = [{pipeline_mode = #tpu.pipeline_mode<synchronous>, transform_indices = @transform_0, window_bounds = array<i64: 8, 128>}, {transform_indices = @transform_1, window_bounds = array<i64: 128, 128>}, {transform_indices = @transform_2, window_bounds = array<i64: 1, 128>}, {transform_indices = @transform_3, window_bounds = array<i64: 8, 128>}]} {
    %c0 = arith.constant 0 : index
    %c0_0 = arith.constant 0 : index
    %0 = vector.load %arg1[%c0, %c0_0] : memref<8x128xf32, #tpu.memory_space<vmem>>, vector<8x128xf32>
    %1 = arith.truncf %0 : vector<8x128xf32> to vector<8x128xbf16>
    %c0_1 = arith.constant 0 : index
    %c0_2 = arith.constant 0 : index
    %2 = vector.load %arg2[%c0_1, %c0_2] : memref<128x128xbf16, #tpu.memory_space<vmem>>, vector<128x128xbf16>
    %cst = arith.constant dense<0.000000e+00> : vector<8x128xf32>
    %3 = tpu.matmul %1, %2, %cst {dimension_numbers = #tpu.dot_dimension_numbers<[1], [0], [0], [1], [0, 0, 1, 1], [], []>} : vector<8x128xbf16>, vector<128x128xbf16>, vector<8x128xf32> -> vector<8x128xf32>
    %c0_3 = arith.constant 0 : index
    %c0_4 = arith.constant 0 : index
    %4 = vector.load %arg3[%c0_3, %c0_4] : memref<1x128xf32, #tpu.memory_space<vmem>>, vector<1x128xf32>
    %5 = vector.broadcast %4 : vector<1x128xf32> to vector<8x128xf32>
    %6 = arith.addf %3, %5 : vector<8x128xf32>
    %cst_5 = arith.constant dense<0xFF800000> : vector<128xf32>
    %7 = vector.multi_reduction <maximumf>, %6, %cst_5 [0] : vector<8x128xf32> to vector<128xf32>
    %8 = vector.shape_cast %7 : vector<128xf32> to vector<1x128xf32>
    %9 = vector.broadcast %8 : vector<1x128xf32> to vector<8x128xf32>
    %10 = arith.subf %6, %9 : vector<8x128xf32>
    %11 = math.exp %10 : vector<8x128xf32>
    %cst_6 = arith.constant dense<0.000000e+00> : vector<128xf32>
    %12 = vector.multi_reduction <add>, %11, %cst_6 [0] : vector<8x128xf32> to vector<128xf32>
    %13 = vector.shape_cast %12 : vector<128xf32> to vector<1x128xf32>
    %14 = tpu.reciprocal %13 {approx = true} : vector<1x128xf32> -> vector<1x128xf32>
    %15 = vector.broadcast %14 : vector<1x128xf32> to vector<8x128xf32>
    %16 = arith.mulf %11, %15 : vector<8x128xf32>
    %c0_7 = arith.constant 0 : index
    %c0_8 = arith.constant 0 : index
    %17 = vector.load %arg4[%c0_7, %c0_8] : memref<8x128xf32, #tpu.memory_space<vmem>>, vector<8x128xf32>
    tpu.vector_store %arg4[%c0_7, %c0_8], %16 {strides = array<i32>} : memref<8x128xf32, #tpu.memory_space<vmem>>, vector<8x128xf32>,
    return
  }
  func.func @transform_0(%arg0: i32) -> (i32, i32) {
    %c0_i32 = arith.constant 0 : i32
    %c0_i32_0 = arith.constant 0 : i32
    %c0_i32_1 = arith.constant 0 : i32
    return %c0_i32, %c0_i32_0 : i32, i32
  }
  func.func @transform_1(%arg0: i32) -> (i32, i32) {
    %c0_i32 = arith.constant 0 : i32
    %c0_i32_0 = arith.constant 0 : i32
    return %c0_i32, %arg0 : i32, i32
  }
  func.func @transform_2(%arg0: i32) -> (i32, i32) {
    %c0_i32 = arith.constant 0 : i32
    %c0_i32_0 = arith.constant 0 : i32
    return %c0_i32, %arg0 : i32, i32
  }
  func.func @transform_3(%arg0: i32) -> (i32, i32) {
    %c0_i32 = arith.constant 0 : i32
    %c0_i32_0 = arith.constant 0 : i32
    return %c0_i32, %arg0 : i32, i32
  }
}

</mosaic_0001>

<bundles_post_ra>
// kernel: word2vec_forward.2
= control target key start
LH: loop header
LB: loop body
LE: loop exit
PB: predicated region body
PF: predicated region fallthrough
CT: control target
= control target key end

     0   :  { %v193_v0 = vmov 0.0   ;;  %vm194_vm0 = vmmov 0   ;;  %s248_s1 = inlined_call_operand.vmem [shape: bf16[128,128], index: 1, kind: input, shape index: {}]   ;;  %s249_s0 = inlined_call_operand.vmem [shape: bf16[8,128], index: 0, kind: input, shape index: {}]   ;;  %s250_s2 = inlined_call_operand.vmem [shape: f32[1,128], index: 2, kind: input, shape index: {}]   ;;  %s251_s3 = inlined_call_operand.vmem [shape: f32[8,128], index: 3, kind: output, shape index: {}]  }
   0x1   :  { %163 = vmatprep.subr.bf16.mxu0 %v193_v0  ;;  %v185_v1 = vld [vmem:[%s248_s1 + $0x38] sm:$0xff]   ;;  %179 = vmatprep.mubr.msk.bf16.mxu0 %vm194_vm0, %v193_v0  ;;  %v186_v2 = vld [vmem:[%s248_s1 + $0x30] sm:$0xff]   ;;  %v187_v3 = vld [vmem:[%s248_s1 + $0x28] sm:$0xff]  }
   0x2   :  { %164 = vmatpush3.bf16.msra.mxu0 %v185_v1  ;;  %v188_v4 = vld [vmem:[%s248_s1 + $0x20] sm:$0xff]   ;;  %v189_v5 = vld [vmem:[%s248_s1 + $0x18] sm:$0xff]   ;;  %v190_v6 = vld [vmem:[%s248_s1 + $0x10] sm:$0xff]  }
   0x3   :  { %165 = vmatprep.subr.bf16.mxu0 %v193_v0  ;;  %v191_v7 = vld [vmem:[%s248_s1 + $0x8] sm:$0xff]   ;;  %v192_v8 = vld [vmem:[%s248_s1] sm:$0xff]  }
   0x4   :  { %v21_v9 = vld [vmem:[%s249_s0] sm:$0xf] }
   0x5   :  { %v153_v10 = vld [vmem:[%s250_s2] ss:$0 sm:$0xff] }
   0x6   :  { %166 = vmatpush3.bf16.msra.mxu0 %v186_v2 }
   0x7   :  { %167 = vmatprep.subr.bf16.mxu0 %v193_v0 }
   0xa   :  { %168 = vmatpush3.bf16.msra.mxu0 %v187_v3 }
   0xb   :  { %169 = vmatprep.subr.bf16.mxu0 %v193_v0 }
   0xe   :  { %170 = vmatpush3.bf16.msra.mxu0 %v188_v4 }
   0xf   :  { %171 = vmatprep.subr.bf16.mxu0 %v193_v0 }
  0x12   :  { %172 = vmatpush3.bf16.msra.mxu0 %v189_v5 }
  0x13   :  { %173 = vmatprep.subr.bf16.mxu0 %v193_v0 }
  0x16   :  { %174 = vmatpush3.bf16.msra.mxu0 %v190_v6 }
  0x17   :  { %175 = vmatprep.subr.bf16.mxu0 %v193_v0 }
  0x1a   :  { %176 = vmatpush3.bf16.msra.mxu0 %v191_v7 }
  0x1b   :  { %177 = vmatprep.subr.bf16.mxu0 %v193_v0 }
  0x1e   :  { %178 = vmatpush3.bf16.msra.mxu0 %v192_v8 }
  0x21   :  { %180 = vmatmul.mubr.bf16.vlgmr.msra.gmra.mxu0 %v21_v9 }
  0xe1   :  { %v120_v11 = vpop.f32.mrf.mxu0 }
  0xe2   :  { %v139_v12 = vadd.f32 %v153_v10, %v120_v11 }
  0xe3   :  { %v181_v13 = vpop.f32.mrf.mxu0 }
  0xe4   :  { %140 = vst [vmem:[%s251_s3] sm:$0xff] %v139_v12 }
  0xe5   :  { %v123_v14 = vpop.f32.mrf.mxu0 }
  0xe7   :  { %v182_v15 = vpop.f32.mrf.mxu0 }

// kernel: word2vec_forward.3
= control target key start
LH: loop header
LB: loop body
LE: loop exit
PB: predicated region body
PF: predicated region fallthrough
CT: control target
= control target key end

     0   :  { %v236_v1 = vmov 0.0   ;;  %vm237_vm0 = vmmov 0   ;;  %s292_s0 = inlined_call_operand.vmem [shape: f32[8,128], index: 0, kind: input, shape index: {}]   ;;  %s293_s1 = inlined_call_operand.vmem [shape: bf16[128,128], index: 1, kind: input, shape index: {}]   ;;  %s294_s2 = inlined_call_operand.vmem [shape: f32[1,128], index: 2, kind: input, shape index: {}]   ;;  %s295_s3 = inlined_call_operand.hbm [shape: f32[8,128], index: 3, kind: output, shape index: {}]  }
   0x1   :  { %v202_v0 = vld [vmem:[%s293_s1 + $0x38] sm:$0xff]   ;;  %179 = vmatprep.subr.bf16.mxu0 %v236_v1  ;;  %v203_v2 = vld [vmem:[%s293_s1 + $0x30] sm:$0xff]   ;;  %195 = vmatprep.mubr.msk.bf16.mxu0 %vm237_vm0, %v236_v1  ;;  %v204_v3 = vld [vmem:[%s293_s1 + $0x28] sm:$0xff]  }
   0x2   :  { %180 = vmatpush3.bf16.msra.mxu0 %v202_v0 }
   0x3   :  { %181 = vmatprep.subr.bf16.mxu0 %v236_v1 }
   0x6   :  { %182 = vmatpush3.bf16.msra.mxu0 %v203_v2 }
   0x7   :  { %183 = vmatprep.subr.bf16.mxu0 %v236_v1 }
   0x8   :  { %8 = vsyncpa [#allocation3], 0  ;;  %v205_v4 = vld [vmem:[%s293_s1 + $0x20] sm:$0xff]   ;;  %v206_v5 = vld [vmem:[%s293_s1 + $0x18] sm:$0xff]  }
   0x9   :  { %v207_v6 = vld [vmem:[%s293_s1 + $0x10] sm:$0xff]   ;;  %v208_v7 = vld [vmem:[%s293_s1 + $0x8] sm:$0xff]   ;;  %v209_v8 = vld [vmem:[%s293_s1] sm:$0xff]  }
   0xa   :  { %184 = vmatpush3.bf16.msra.mxu0 %v204_v3  ;;  %v16_v9 = vld [vmem:[%s292_s0] sm:$0xff]  ;;  %s238_s0 = smov [#allocation2]  }
   0xb   :  { %185 = vmatprep.subr.bf16.mxu0 %v236_v1  ;;  %v17_v10 = vpack.c.bf16 %v16_v9, %v16_v9  ;;  %v161_v11 = vld [vmem:[%s294_s2] ss:$0 sm:$0xff]  ;;  %s153_s1 = sshll.u32 %s238_s0, 4  ;;  %s154_s1 = int_to_ptr.vmem [resolvable:$true] %s153_s1 }
   0xc   :  { %s214_s2 = scalar_lea.vmem %s154_s1, 128  ;;  %p219_p1 = scmp.lt.s32.totalorder %s154_s1, %s154_s1 }
   0xd   :  { %p215_p0 = scmp.ne.s32.totalorder %s154_s1, %s214_s2  ;;  %p220_p2 = scmp.lt.s32.totalorder %s214_s2, %s214_s2 }
   0xe   :  { %186 = vmatpush3.bf16.msra.mxu0 %v205_v4 }
   0xf   :  { %187 = vmatprep.subr.bf16.mxu0 %v236_v1  ;;  %p221_p3 = por %p220_p2, %p219_p1 }
  0x11   :  { %p222_p4 = pnand %p221_p3, %p215_p0 }
  0x12   :  { %188 = vmatpush3.bf16.msra.mxu0 %v206_v5 }
  0x13   :  { %189 = vmatprep.subr.bf16.mxu0 %v236_v1 }
  0x16   :  { %190 = vmatpush3.bf16.msra.mxu0 %v207_v6 }
  0x17   :  { %191 = vmatprep.subr.bf16.mxu0 %v236_v1 }
  0x1a   :  { %192 = vmatpush3.bf16.msra.mxu0 %v208_v7 }
  0x1b   :  { %193 = vmatprep.subr.bf16.mxu0 %v236_v1 }
  0x1e   :  { %194 = vmatpush3.bf16.msra.mxu0 %v209_v8 }
  0x21   :  { %196 = vmatmul.mubr.bf16.vlgmr.msra.gmra.mxu0 %v17_v10 }
  0xe1   :  { %v123_v12 = vpop.f32.mrf.mxu0 }
  0xe2   :  { %v124_v13 = vadd.f32 %v161_v11, %v123_v12 }
  0xe3   :  { %v197_v14 = vpop.f32.mrf.mxu0 }
  0xe4   :  { %v129_v15 = vrot.slane %v124_v13, 4 }
  0xe5   :  { %v126_v16 = vpop.f32.mrf.mxu0 }
  0xe6   :  { %v130_v17 = vmax.f32 %v124_v13, %v129_v15 }
  0xe7   :  { %v198_v18 = vpop.f32.mrf.mxu0 }
  0xe8   :  { %v131_v19 = vrot.slane %v130_v17, 2 }
  0xea   :  { %v132_v20 = vmax.f32 %v130_v17, %v131_v19 }
  0xec   :  { %v133_v21 = vrot.slane %v132_v20, 1 }
  0xee   :  { %v134_v22 = vmax.f32 %v132_v20, %v133_v21 }
  0xf0   :  { %v135_v23 = vsub.f32 %v124_v13, %v134_v22 }
  0xf2   :  { %v136_v24 = vmul.f32 1.442695, %v135_v23 }
  0xf4   :  { %210 = vpow2.f32 %v136_v24 }
 0x101   :  { %v211_v25 = vpop.eup %210 }
 0x102   :  { %v138_v26 = vrot.slane %v211_v25, 4 }
 0x104   :  { %v139_v27 = vadd.f32 %v211_v25, %v138_v26 }
 0x106   :  { %v140_v28 = vrot.slane %v139_v27, 2 }
 0x108   :  { %v141_v29 = vadd.f32 %v140_v28, %v139_v27 }
 0x10a   :  { %v142_v30 = vrot.slane %v141_v29, 1 }
 0x10c   :  { %v143_v31 = vadd.f32 %v142_v30, %v141_v29 }
 0x10e   :  { %212 = vrcp.f32 %v143_v31 }
 0x11b   :  { %v213_v32 = vpop.eup %212 }
 0x11c   :  { %v145_v33 = vmul.f32 %v213_v32, %v211_v25 }
 0x11e   :  { %146 = vst [vmem:[#allocation2] sm:$0xff] %v145_v33 }
 0x11f   :  { %225 = shalt.err (!%p222_p4)
}
 0x120   :  { %156 = dma.vmem_to_hbm [thread:$0]  %s154_s1, 128, %s295_s3, [#allocation3]  }
 0x121   :  { %234 = dma.done.wait [#allocation3], 128  }
 0x122   :  { %235 = vsyncadd [#allocation3], 4294967168 }
 0x123   :  { %160 = vsyncpa [#allocation3], 1 }

</bundles_post_ra>
